<compile_context>
chip_gen: v7x
topology: tpu7x:2x2x1
jax: 0.10.0
libtpu: 0.0.40
codegen_flags: <defaults>
</compile_context>

<pallas_src>
import math

import jax
import jax.numpy as jnp
from jax.experimental import pallas as pl
from jax.experimental.pallas import tpu as pltpu

EMB_MASK_PROBA = 0.1   # AudioDiffusionConditional default embedding_mask_proba
N_FREQ = 8             # sigma fourier features for the conditioning glue
MAX_TILE_T = 512       # T-tile cap, chosen with v7x's 64 MiB VMEM in mind.
                       # TODO(synk): raise per generation (v5e/v6e have 128 MiB).


def _vdiffusion_kernel(alpha_ref, beta_ref, x_ref, noise_ref, cond_ref,
                       w_in_ref, w_out_ref, sse_ref, h_ref):
    """One (batch b, T-tile t) grid step.

    x_ref, noise_ref : (C, TILE_T) f32   audio tile / gaussian noise tile
    alpha_ref/beta_ref : (B,) f32 SMEM   per-batch v-diffusion coefficients
    cond_ref : (H, 1) f32                per-batch conditioning column
    w_in_ref : (H, C) bf16, w_out_ref : (C, H) bf16   stand-in denoiser weights
    sse_ref : (C, LANE) f32              per-batch partial sum of squared error
    h_ref   : (H, TILE_T) f32 VMEM scratch (largest per-block intermediate)
    """
    b = pl.program_id(0)
    t = pl.program_id(1)

    # The output block index ignores t, so it stays resident across the whole
    # T axis for this batch entry: zero on the first tile, accumulate on every
    # tile (P3 accumulator pattern).
    @pl.when(t == 0)
    def _():
        sse_ref[...] = jnp.zeros_like(sse_ref)

    alpha = alpha_ref[b]
    beta = beta_ref[b]
    x = x_ref[...]
    noise = noise_ref[...]

    # v-diffusion noising — elementwise math stays f32 (v5e VPU is f32-only).
    x_noisy = alpha * x + beta * noise
    v_target = alpha * noise - beta * x

    # Stand-in conditional pointwise denoiser: bf16-fed MXU matmuls, f32 acc.
    # (MXU occupancy is irrelevant at C=8/H=32 — the kernel is HBM/VPU bound;
    # align C/H to 128/256 once the real UNetCFG1d channel counts exist.)
    h_ref[...] = jnp.dot(w_in_ref[...], x_noisy.astype(jnp.bfloat16),
                         preferred_element_type=jnp.float32)      # (H, TILE_T)
    # TODO(synk): PyTorch nn.GELU defaults to exact erf; the tanh approximation
    # is used here (Mosaic/EUP-native) — tiny mismatch in this stand-in net.
    h_ref[...] = jax.nn.gelu(h_ref[...] + cond_ref[...])
    v_pred = jnp.dot(w_out_ref[...], h_ref[...].astype(jnp.bfloat16),
                     preferred_element_type=jnp.float32)          # (C, TILE_T)

    # Fold this tile's squared error into (C, LANE) with pure VPU adds; the
    # single cross-lane reduce happens once, in the wrapper.
    diff = v_pred - v_target
    d2 = diff * diff
    c, tt = d2.shape
    lane = sse_ref.shape[-1]
    sse_ref[...] += d2.reshape(c, tt // lane, lane).sum(axis=1)


def _pick_tile_t(T):
    """Largest lane-aligned T-tile that divides T, capped by MAX_TILE_T."""
    if T % 128 != 0:
        return T          # tiny-T fallback: single full-extent block
    tile = 128
    while tile * 2 <= min(T, MAX_TILE_T) and T % (tile * 2) == 0:
        tile *= 2
    return tile


def _vmem_limit_bytes(C, H, tile_t, lane):
    f32 = 4
    per_step = (2 * C * tile_t * f32        # x + noise tiles
                + H * f32                   # cond column
                + C * lane * f32)           # partial-SSE output block
    fixed = (2 * H * C) * 2 + H * tile_t * f32   # bf16 weights + h scratch
    est = 2 * per_step + fixed                    # 2x double-buffered pipeline
    # Generous headroom; never below the per-chip scoped default, never above
    # v7x's 64 MiB physical VMEM.
    return int(min(max(4 * est, 32 << 20), 64 << 20))


def make_params(key, in_channels, hidden, embedding_features):
    """Deterministic synthetic parameters for the stand-in denoiser."""
    k1, k2, k3, k4 = jax.random.split(key, 4)

    def init(k, shape, fan_in):
        return jax.random.normal(k, shape, jnp.float32) / jnp.sqrt(jnp.float32(fan_in))

    return {
        "w_in_t": init(k1, (hidden, in_channels), in_channels),               # (H, C)
        "w_out_t": init(k2, (in_channels, hidden), hidden),                   # (C, H)
        "w_time": init(k3, (2 * N_FREQ, hidden), 2 * N_FREQ),                 # (2F, H)
        "w_ctx": init(k4, (embedding_features, hidden), embedding_features),  # (E, H)
    }


def audio_diffusion_conditional_forward(x, embedding, params, key,
                                        embedding_mask_proba=EMB_MASK_PROBA):
    """x: (B, C, T) f32, embedding: (B, L, E) f32 -> scalar v-diffusion MSE loss."""
    x = x.astype(jnp.float32)
    B, C, T = x.shape
    H = params["w_in_t"].shape[0]
    k_sigma, k_noise, k_mask = jax.random.split(key, 3)

    # diffusion_sigma_distribution = UniformDistribution()
    sigmas = jax.random.uniform(k_sigma, (B,), dtype=jnp.float32)
    angle = sigmas * (math.pi / 2.0)
    alphas = jnp.cos(angle)
    betas = jnp.sin(angle)

    # CFG embedding dropout with prob embedding_mask_proba (whole batch entries).
    keep = jax.random.uniform(k_mask, (B, 1, 1)) >= embedding_mask_proba
    emb = jnp.where(keep, embedding, 0.0)
    # TODO(synk): UNetCFG1d replaces dropped embeddings with a *learned* fixed
    # embedding; zeros are used here since no learned parameters exist.

    # Conditioning glue (tiny matmuls, plain JAX): sigma fourier features +
    # mean-pooled context embedding projected to the hidden dim.
    freqs = 2.0 ** jnp.arange(N_FREQ, dtype=jnp.float32)
    tf = sigmas[:, None] * freqs[None, :]
    temb = jnp.concatenate([jnp.sin(tf), jnp.cos(tf)], axis=-1)               # (B, 2F)
    cond = temb @ params["w_time"] + jnp.mean(emb, axis=1) @ params["w_ctx"]  # (B, H)
    cond3 = cond.astype(jnp.float32)[:, :, None]                              # (B, H, 1)

    # Gaussian noise drawn in the wrapper.
    # TODO(synk): pltpu.prng_seed/stateful_normal would remove this x-sized HBM
    # stream on real TPUs, but they have no CPU-interpret lowering.
    noise = jax.random.normal(k_noise, x.shape, dtype=jnp.float32)
    # TODO(synk): optionally stream x/noise as bf16 (halves the dominant HBM
    # traffic) once the precision tradeoff is signed off.

    w_in = params["w_in_t"].astype(jnp.bfloat16)     # (H, C)
    w_out = params["w_out_t"].astype(jnp.bfloat16)   # (C, H)

    tile_t = _pick_tile_t(T)
    nt = T // tile_t
    lane = 128 if tile_t % 128 == 0 else tile_t

    partial_sse = pl.pallas_call(
        _vdiffusion_kernel,
        out_shape=jax.ShapeDtypeStruct((B, C, lane), jnp.float32),
        grid=(B, nt),
        in_specs=[
            pl.BlockSpec(memory_space=pltpu.MemorySpace.SMEM),           # alphas (B,)
            pl.BlockSpec(memory_space=pltpu.MemorySpace.SMEM),           # betas  (B,)
            pl.BlockSpec((None, C, tile_t), lambda b, t: (b, 0, t)),     # x tile
            pl.BlockSpec((None, C, tile_t), lambda b, t: (b, 0, t)),     # noise tile
            pl.BlockSpec((None, H, 1), lambda b, t: (b, 0, 0)),          # cond column
            pl.BlockSpec((H, C), lambda b, t: (0, 0)),                   # w_in (resident)
            pl.BlockSpec((C, H), lambda b, t: (0, 0)),                   # w_out (resident)
        ],
        out_specs=pl.BlockSpec((None, C, lane), lambda b, t: (b, 0, 0)),
        scratch_shapes=[pltpu.VMEM((H, tile_t), jnp.float32)],
        compiler_params=pltpu.CompilerParams(
            dimension_semantics=("parallel", "arbitrary"),
            vmem_limit_bytes=_vmem_limit_bytes(C, H, tile_t, lane),
        ),
    )(alphas, betas, x, noise, cond3, w_in, w_out)

    # F.mse_loss(v_pred, v_target): mean over all elements.
    return jnp.sum(partial_sse) / (B * C * T)


# TODO(synk): the full UNetCFG1d denoiser (channels=128, patch_size=16,
# multipliers/factors/attentions stack) is not defined in the provided snippet
# (self.unet = self.diffusion = None); a minimal conditional pointwise network
# stands in for it above.

if __name__ == "__main__":
    B, C, T = 2, 8, 2048                # batch, audio channels, time samples
    EMB_FEATURES, EMB_MAX_LEN, HIDDEN = 32, 8, 32

    root = jax.random.PRNGKey(0)
    k_x, k_emb, k_params, k_fwd = jax.random.split(root, 4)

    x = jax.random.normal(k_x, (B, C, T), dtype=jnp.float32)
    embedding = jax.random.normal(k_emb, (B, EMB_MAX_LEN, EMB_FEATURES),
                                  dtype=jnp.float32)
    params = make_params(k_params, C, HIDDEN, EMB_FEATURES)

    loss = audio_diffusion_conditional_forward(x, embedding, params, k_fwd)
    jax.block_until_ready(loss)
    assert loss.shape == () and bool(jnp.isfinite(loss))
    print("KERNEL_OK")
</pallas_src>

<mosaic_0001>
module attributes {stable_mosaic.version = 11 : i64} {
  func.func @_vdiffusion_kernel(%arg0: i32, %arg1: i32, %arg2: memref<2xf32, #tpu.memory_space<smem>>, %arg3: memref<2xf32, #tpu.memory_space<smem>>, %arg4: memref<1x8x512xf32, #tpu.memory_space<vmem>>, %arg5: memref<1x8x512xf32, #tpu.memory_space<vmem>>, %arg6: memref<1x32x1xf32, #tpu.memory_space<vmem>>, %arg7: memref<32x8xbf16, #tpu.memory_space<vmem>>, %arg8: memref<8x32xbf16, #tpu.memory_space<vmem>>, %arg9: memref<1x8x128xf32, #tpu.memory_space<vmem>>, %arg10: memref<32x512xf32, #tpu.memory_space<vmem>>) attributes {dimension_semantics = [#tpu.dimension_semantics<parallel>, #tpu.dimension_semantics<arbitrary>], iteration_bounds = array<i64: 2, 4>, scalar_prefetch = 0 : i64, scratch_operands = 1 : i64, tpu.core_type = #tpu.core_type<tc>, window_params = [{transform_indices = @transform_0, window_bounds = array<i64: 2>}, {transform_indices = @transform_1, window_bounds = array<i64: 2>}, {transform_indices = @transform_2, window_bounds = array<i64: 1, 8, 512>}, {transform_indices = @transform_3, window_bounds = array<i64: 1, 8, 512>}, {transform_indices = @transform_4, window_bounds = array<i64: 1, 32, 1>}, {pipeline_mode = #tpu.pipeline_mode<synchronous>, transform_indices = @transform_5, window_bounds = array<i64: 32, 8>}, {pipeline_mode = #tpu.pipeline_mode<synchronous>, transform_indices = @transform_6, window_bounds = array<i64: 8, 32>}, {transform_indices = @transform_7, window_bounds = array<i64: 1, 8, 128>}]} {
    %c0_i32 = arith.constant 0 : i32
    %0 = arith.cmpi eq, %arg1, %c0_i32 : i32
    %1 = arith.extui %0 : i1 to i32
    %c0_i32_0 = arith.constant 0 : i32
    %2 = arith.cmpi ne, %1, %c0_i32_0 : i32
    scf.if %2 {
      %cst_33 = arith.constant 0.000000e+00 : f32
      %58 = vector.broadcast %cst_33 : f32 to vector<8x128xf32>
      %c0_34 = arith.constant 0 : index
      %c0_35 = arith.constant 0 : index
      %c0_36 = arith.constant 0 : index
      %59 = vector.load %arg9[%c0_34, %c0_35, %c0_36] : memref<1x8x128xf32, #tpu.memory_space<vmem>>, vector<1x8x128xf32>
      %60 = vector.shape_cast %59 : vector<1x8x128xf32> to vector<8x128xf32>
      %61 = vector.shape_cast %58 : vector<8x128xf32> to vector<1x8x128xf32>
      tpu.vector_store %arg9[%c0_34, %c0_35, %c0_36], %61 {strides = array<i32>} : memref<1x8x128xf32, #tpu.memory_space<vmem>>, vector<1x8x128xf32>,
    } else {
    }
    %3 = arith.index_cast %arg0 : i32 to index
    %4 = memref.load %arg2[%3] : memref<2xf32, #tpu.memory_space<smem>>
    %5 = arith.index_cast %arg0 : i32 to index
    %6 = memref.load %arg3[%5] : memref<2xf32, #tpu.memory_space<smem>>
    %c0 = arith.constant 0 : index
    %c0_1 = arith.constant 0 : index
    %c0_2 = arith.constant 0 : index
    %7 = vector.load %arg4[%c0, %c0_1, %c0_2] : memref<1x8x512xf32, #tpu.memory_space<vmem>>, vector<1x8x512xf32>
    %8 = vector.shape_cast %7 : vector<1x8x512xf32> to vector<8x512xf32>
    %c0_3 = arith.constant 0 : index
    %c0_4 = arith.constant 0 : index
    %c0_5 = arith.constant 0 : index
    %9 = vector.load %arg5[%c0_3, %c0_4, %c0_5] : memref<1x8x512xf32, #tpu.memory_space<vmem>>, vector<1x8x512xf32>
    %10 = vector.shape_cast %9 : vector<1x8x512xf32> to vector<8x512xf32>
    %11 = vector.broadcast %4 : f32 to vector<8x512xf32>
    %12 = arith.mulf %11, %8 : vector<8x512xf32>
    %13 = vector.broadcast %6 : f32 to vector<8x512xf32>
    %14 = arith.mulf %13, %10 : vector<8x512xf32>
    %15 = arith.addf %12, %14 : vector<8x512xf32>
    %16 = vector.broadcast %4 : f32 to vector<8x512xf32>
    %17 = arith.mulf %16, %10 : vector<8x512xf32>
    %18 = vector.broadcast %6 : f32 to vector<8x512xf32>
    %19 = arith.mulf %18, %8 : vector<8x512xf32>
    %20 = arith.subf %17, %19 : vector<8x512xf32>
    %c0_6 = arith.constant 0 : index
    %c0_7 = arith.constant 0 : index
    %21 = vector.load %arg7[%c0_6, %c0_7] : memref<32x8xbf16, #tpu.memory_space<vmem>>, vector<32x8xbf16>
    %22 = arith.truncf %15 : vector<8x512xf32> to vector<8x512xbf16>
    %cst = arith.constant dense<0.000000e+00> : vector<32x512xf32>
    %23 = tpu.matmul %21, %22, %cst {dimension_numbers = #tpu.dot_dimension_numbers<[1], [0], [0], [1], [0, 0, 1, 1], [], []>} : vector<32x8xbf16>, vector<8x512xbf16>, vector<32x512xf32> -> vector<32x512xf32>
    %c0_8 = arith.constant 0 : index
    %c0_9 = arith.constant 0 : index
    %24 = vector.load %arg10[%c0_8, %c0_9] : memref<32x512xf32, #tpu.memory_space<vmem>>, vector<32x512xf32>
    tpu.vector_store %arg10[%c0_8, %c0_9], %23 {strides = array<i32>} : memref<32x512xf32, #tpu.memory_space<vmem>>, vector<32x512xf32>,
    %c0_10 = arith.constant 0 : index
    %c0_11 = arith.constant 0 : index
    %25 = vector.load %arg10[%c0_10, %c0_11] : memref<32x512xf32, #tpu.memory_space<vmem>>, vector<32x512xf32>
    %c0_12 = arith.constant 0 : index
    %c0_13 = arith.constant 0 : index
    %c0_14 = arith.constant 0 : index
    %26 = vector.load %arg6[%c0_12, %c0_13, %c0_14] : memref<1x32x1xf32, #tpu.memory_space<vmem>>, vector<1x32x1xf32>
    %27 = vector.shape_cast %26 : vector<1x32x1xf32> to vector<32x1xf32>
    %28 = vector.broadcast %27 : vector<32x1xf32> to vector<32x512xf32>
    %29 = arith.addf %25, %28 : vector<32x512xf32>
    %30 = arith.mulf %29, %29 : vector<32x512xf32>
    %31 = arith.mulf %29, %30 : vector<32x512xf32>
    %cst_15 = arith.constant 4.471500e-02 : f32
    %32 = vector.broadcast %cst_15 : f32 to vector<32x512xf32>
    %33 = arith.mulf %32, %31 : vector<32x512xf32>
    %34 = arith.addf %29, %33 : vector<32x512xf32>
    %cst_16 = arith.constant 0.797884583 : f32
    %35 = vector.broadcast %cst_16 : f32 to vector<32x512xf32>
    %36 = arith.mulf %35, %34 : vector<32x512xf32>
    %37 = math.tanh %36 : vector<32x512xf32>
    %cst_17 = arith.constant 1.000000e+00 : f32
    %38 = vector.broadcast %cst_17 : f32 to vector<32x512xf32>
    %39 = arith.addf %38, %37 : vector<32x512xf32>
    %cst_18 = arith.constant 5.000000e-01 : f32
    %40 = vector.broadcast %cst_18 : f32 to vector<32x512xf32>
    %41 = arith.mulf %40, %39 : vector<32x512xf32>
    %42 = arith.mulf %29, %41 : vector<32x512xf32>
    %c0_19 = arith.constant 0 : index
    %c0_20 = arith.constant 0 : index
    %43 = vector.load %arg10[%c0_19, %c0_20] : memref<32x512xf32, #tpu.memory_space<vmem>>, vector<32x512xf32>
    tpu.vector_store %arg10[%c0_19, %c0_20], %42 {strides = array<i32>} : memref<32x512xf32, #tpu.memory_space<vmem>>, vector<32x512xf32>,
    %c0_21 = arith.constant 0 : index
    %c0_22 = arith.constant 0 : index
    %44 = vector.load %arg8[%c0_21, %c0_22] : memref<8x32xbf16, #tpu.memory_space<vmem>>, vector<8x32xbf16>
    %c0_23 = arith.constant 0 : index
    %c0_24 = arith.constant 0 : index
    %45 = vector.load %arg10[%c0_23, %c0_24] : memref<32x512xf32, #tpu.memory_space<vmem>>, vector<32x512xf32>
    %46 = arith.truncf %45 : vector<32x512xf32> to vector<32x512xbf16>
    %cst_25 = arith.constant dense<0.000000e+00> : vector<8x512xf32>
    %47 = tpu.matmul %44, %46, %cst_25 {dimension_numbers = #tpu.dot_dimension_numbers<[1], [0], [0], [1], [0, 0, 1, 1], [], []>} : vector<8x32xbf16>, vector<32x512xbf16>, vector<8x512xf32> -> vector<8x512xf32>
    %48 = arith.subf %47, %20 : vector<8x512xf32>
    %49 = arith.mulf %48, %48 : vector<8x512xf32>
    %c0_26 = arith.constant 0 : index
    %c0_27 = arith.constant 0 : index
    %c0_28 = arith.constant 0 : index
    %50 = vector.load %arg9[%c0_26, %c0_27, %c0_28] : memref<1x8x128xf32, #tpu.memory_space<vmem>>, vector<1x8x128xf32>
    %51 = vector.shape_cast %50 : vector<1x8x128xf32> to vector<8x128xf32>
    %52 = vector.shape_cast %49 : vector<8x512xf32> to vector<8x4x128xf32>
    %cst_29 = arith.constant dense<0.000000e+00> : vector<8x128xf32>
    %53 = vector.multi_reduction <add>, %52, %cst_29 [1] : vector<8x4x128xf32> to vector<8x128xf32>
    %54 = arith.addf %51, %53 : vector<8x128xf32>
    %c0_30 = arith.constant 0 : index
    %c0_31 = arith.constant 0 : index
    %c0_32 = arith.constant 0 : index
    %55 = vector.load %arg9[%c0_30, %c0_31, %c0_32] : memref<1x8x128xf32, #tpu.memory_space<vmem>>, vector<1x8x128xf32>
    %56 = vector.shape_cast %55 : vector<1x8x128xf32> to vector<8x128xf32>
    %57 = vector.shape_cast %54 : vector<8x128xf32> to vector<1x8x128xf32>
    tpu.vector_store %arg9[%c0_30, %c0_31, %c0_32], %57 {strides = array<i32>} : memref<1x8x128xf32, #tpu.memory_space<vmem>>, vector<1x8x128xf32>,
    return
  }
  func.func @transform_0(%arg0: i32, %arg1: i32) -> i32 {
    %c0_i32 = arith.constant 0 : i32
    %c0_i32_0 = arith.constant 0 : i32
    return %c0_i32 : i32
  }
  func.func @transform_1(%arg0: i32, %arg1: i32) -> i32 {
    %c0_i32 = arith.constant 0 : i32
    %c0_i32_0 = arith.constant 0 : i32
    return %c0_i32 : i32
  }
  func.func @transform_2(%arg0: i32, %arg1: i32) -> (i32, i32, i32) {
    %c0_i32 = arith.constant 0 : i32
    %c0_i32_0 = arith.constant 0 : i32
    return %arg0, %c0_i32, %arg1 : i32, i32, i32
  }
  func.func @transform_3(%arg0: i32, %arg1: i32) -> (i32, i32, i32) {
    %c0_i32 = arith.constant 0 : i32
    %c0_i32_0 = arith.constant 0 : i32
    return %arg0, %c0_i32, %arg1 : i32, i32, i32
  }
  func.func @transform_4(%arg0: i32, %arg1: i32) -> (i32, i32, i32) {
    %c0_i32 = arith.constant 0 : i32
    %c0_i32_0 = arith.constant 0 : i32
    %c0_i32_1 = arith.constant 0 : i32
    return %arg0, %c0_i32, %c0_i32_0 : i32, i32, i32
  }
  func.func @transform_5(%arg0: i32, %arg1: i32) -> (i32, i32) {
    %c0_i32 = arith.constant 0 : i32
    %c0_i32_0 = arith.constant 0 : i32
    %c0_i32_1 = arith.constant 0 : i32
    return %c0_i32, %c0_i32_0 : i32, i32
  }
  func.func @transform_6(%arg0: i32, %arg1: i32) -> (i32, i32) {
    %c0_i32 = arith.constant 0 : i32
    %c0_i32_0 = arith.constant 0 : i32
    %c0_i32_1 = arith.constant 0 : i32
    return %c0_i32, %c0_i32_0 : i32, i32
  }
  func.func @transform_7(%arg0: i32, %arg1: i32) -> (i32, i32, i32) {
    %c0_i32 = arith.constant 0 : i32
    %c0_i32_0 = arith.constant 0 : i32
    %c0_i32_1 = arith.constant 0 : i32
    return %arg0, %c0_i32, %c0_i32_0 : i32, i32, i32
  }
}

</mosaic_0001>

<bundles_post_ra>
// kernel: tpu_custom_call.1
= control target key start
LH: loop header
LB: loop body
LE: loop exit
PB: predicated region body
PF: predicated region fallthrough
CT: control target
= control target key end

     0   :  { %s2246_s0 = inlined_call_operand.vmem [shape: f32[2], index: 0, kind: input, shape index: {}]   ;;  %s2247_s1 = inlined_call_operand.vmem [shape: f32[2], index: 1, kind: input, shape index: {}]   ;;  %s2248_s2 = inlined_call_operand.hbm [shape: f32[2,8,2048], index: 2, kind: input, shape index: {}]   ;;  %s2249_s3 = inlined_call_operand.hbm [shape: f32[2,8,2048], index: 3, kind: input, shape index: {}]   ;;  %s2250_s4 = inlined_call_operand.vmem [shape: f32[2,32,1], index: 4, kind: input, shape index: {}]   ;;  %s2251_s5 = inlined_call_operand.vmem [shape: bf16[32,8], index: 5, kind: input, shape index: {}]   ;;  %s2252_s6 = inlined_call_operand.vmem [shape: bf16[8,32], index: 6, kind: input, shape index: {}]   ;;  %s2253_s7 = inlined_call_operand.hbm [shape: f32[2,8,128], index: 7, kind: output, shape index: {}]  }
   0x1   :  { %2268 = sst [smem:[#allocation25_spill]] %s2246_s0 }
   0x2   :  { %2269 = sst [smem:[#allocation26_spill]] %s2247_s1 }
   0x3   :  { %2270 = sst [smem:[#allocation27_spill]] %s2250_s4 }
   0x4   :  { %2271 = sst [smem:[#allocation28_spill]] %s2251_s5 }
   0x5   :  { %2272 = sst [smem:[#allocation29_spill]] %s2252_s6 }
   0x6   :  { %2273 = sst [smem:[#allocation30_spill]] %s2253_s7 }
   0x7   :  { %12 = vsyncpa [#allocation6], 0 }
   0x8   :  { %13 = vsyncpa [#allocation8], 0 }
   0x9   :  { %14 = vsyncpa [#allocation4], 0 }
   0xa   :  { %16 = vsyncpa [#allocation4 + $0x1], 0 }
   0xb   :  { %17 = vsyncpa [#allocation11], 0 }
   0xc   :  { %19 = vsyncpa [#allocation11 + $0x1], 0 }
   0xd   :  { %20 = vsyncpa [#allocation5], 0 }
   0xe   :  { %22 = vsyncpa [#allocation5 + $0x1], 0  ;;  %s1730_s24 = smov 0   ;;  %s1732_s25 = smov 0  }
   0xf   :  { %s1734_s26 = smov 0   ;;  %s1736_s27 = smov 0  }
  0x10   :  { %s1738_s28 = smov 0   ;;  %s1740_s29 = smov 0  }
  0x11   :  { %s1742_s30 = smov 0   ;;  %s1744_s8 = smov 0  }
  0x12   :  { %s1746_s9 = smov 0   ;;  %s1748_s10 = smov 0  }
  0x13   :  { %s1750_s11 = smov 0  }
  0x14 LB: > { %2274 = sst [smem:[#allocation18_spill]] %s1638_s24  ;;  %s1247_s12 = sadd.s32 4294967295, %s1678_s11   ;;  %s1678_s11 = sphi %s1750_s11, %s28_s11   ;;  %s1674_s10 = sphi %s1748_s10, %s2316_s10   ;;  %s1670_s9 = sphi %s1746_s9, %s2307_s9   ;;  %s1666_s8 = sphi %s1744_s8, %s2315_s8   ;;  %s1662_s30 = sphi %s1742_s30, %s2306_s30   ;;  %s1658_s29 = sphi %s1740_s29, %s2314_s29   ;;  %s1654_s28 = sphi %s1738_s28, %s2313_s28   ;;  %s1650_s27 = sphi %s1736_s27, %s2312_s27   ;;  %s1646_s26 = sphi %s1734_s26, %s2311_s26   ;;  %s1642_s25 = sphi %s1732_s25, %s2310_s25   ;;  %s1638_s24 = sphi %s1730_s24, %s2309_s24  }
  0x15   : > { %2275 = sst [smem:[#allocation19_spill]] %s1662_s30  ;;  %s1248_s13 = sadd.s32 4294967294, %s1678_s11  }
  0x16   : > { %2276 = sst [smem:[#allocation20_spill]] %s1670_s9  ;;  %p104_p0 = scmp.ne.s32.totalorder %s1654_s28, %s1650_s27 }
  0x17   : > { %p1786_p1 = scmp.eq.s32.totalorder %s1247_s12, 0  ;;  %p223_p2 = scmp.ne.s32.totalorder %s1646_s26, %s1642_s25 }
  0x18   : > { %p224_p4 = scmp.eq.s32.totalorder %s1247_s12, 7  ;;  %p229_p5 = scmp.ne.s32.totalorder %s1642_s25, %s1638_s24 }
  0x19   : > { %s2277_s14 = scalar_select %p1786_p1, 1, 0 }
  0x1a   : > { %p1795_p3 = por %p1786_p1, %p104_p0  ;;  %p230_p6 = scmp.eq.s32.totalorder %s1248_s13, 7 }
  0x1b   : > { %p1801_p7 = por %p224_p4, %p223_p2  ;;  %p1249_p8 = scmp.ge.s32.totalorder %s1678_s11, 1 }
  0x1c   : > { %s2278_s16 = scalar_select %p1795_p3, 1, 0 }
  0x1d   : > { %s2279_s17 = scalar_select %p1801_p7, 1, 0 }
  0x1e   : > { %p1806_p9 = por %p230_p6, %p229_p5  ;;  %p237_p10 = scmp.lt.s32.totalorder %s1678_s11, 9 }
  0x1f   : > { %2280 = sst [smem:[#allocation21_spill]] %s2279_s17  ;;  %s2283_s0 = sld [smem:[#allocation25_spill]] }
  0x20   : > { %s2281_s18 = scalar_select %p1806_p9, 1, 0 }
  0x21   : > { %p1814_p11 = pnand %p1249_p8, %p237_p10  ;;  %s2285_s1 = sld [smem:[#allocation26_spill]] }
  0x22   : > { %2282 = sst [smem:[#allocation22_spill]] %s2281_s18 }
  0x23   : > { %s2284_s22 = scalar_select %p1814_p11, 1, 0 }
  0x24   : > { %p1299_p12 = pneg %p1814_p11 }
  0x25   : > { %s250_s21 = sshll.u32 %s2283_s0, 4  ;;  %s251_s21 = int_to_ptr.vmem [resolvable:$true] %s250_s21 }
  0x26   : > { %p1825_p13 = pnand %p1299_p12, %p1786_p1  ;;  %s1454_s19 = scalar_lea.vmem %s251_s21, 16 }
  0x27   : > { %s261_s12 = sshll.u32 %s2285_s1, 4  ;;  %p1455_p0 = scmp.ne.s32.totalorder %s251_s21, %s1454_s19  ;;  %s262_s12 = int_to_ptr.vmem [resolvable:$true] %s261_s12 }
  0x28   : > { %p1456_p2 = pneg %p1825_p13  ;;  %p1462_p6 = scmp.lt.s32.totalorder %s251_s21, %s251_s21 }
  0x29   : > { %p1463_p8 = scmp.lt.s32.totalorder %s1454_s19, %s1454_s19 }
  0x2a   : > { %p1457_p4 = pnand %p1456_p2, %p1455_p0 }
  0x2b   : > { %p1464_p10 = por %p1463_p8, %p1462_p6 }
  0x2c   : > { %p1458_p5 = pneg %p1457_p4 }
  0x2e   : > { %p1465_p9 = pnand %p1464_p10, %p1458_p5 }
  0x30   : > { %1468 = shalt.err (!%p1465_p9)
}
  0x31   : > { %s1680_s20 = smov [#allocation3]   ;;  %s1469_s23 = scalar_lea.vmem %s262_s12, 16 }
  0x32   : > { %1302 = dma.vmem_to_smem (!%p1825_p13), %s251_s21, 16, %s1680_s20, [#allocation6]  }
  0x33   : > { %p1470_p12 = scmp.ne.s32.totalorder %s262_s12, %s1469_s23  ;;  %p1477_p1 = scmp.lt.s32.totalorder %s262_s12, %s262_s12 }
  0x34   : > { %p1478_p11 = scmp.lt.s32.totalorder %s1469_s23, %s1469_s23 }
  0x35   : > { %p1472_p7 = pnand %p1470_p12, %p1456_p2 }
  0x36   : > { %p1479_p0 = por %p1478_p11, %p1477_p1 }
  0x37   : > { %p1473_p3 = pneg %p1472_p7 }
  0x39   : > { %p1480_p4 = pnand %p1479_p0, %p1473_p3 }
  0x3b   : > { %1483 = shalt.err (!%p1480_p4)
}
  0x3c   : > { %s1681_s27 = smov [#allocation7]   ;;  %s37_s21 = sadd.s32 1, %s1670_s9 }
  0x3d   : > { %1305 = dma.vmem_to_smem (!%p1825_p13), %s262_s12, 16, %s1681_s27, [#allocation8]  }
  0x3e   : > { %s40_s19 = sadd.s32 1, %s1674_s10  ;;  %p38_p1 = scmp.ge.s32.totalorder %s37_s21, 4 }
  0x3f   : > { %s91_s20 = sadd.s32 1, %s1658_s29  ;;  %p98_p3 = scmp.ne.s32.totalorder %s1658_s29, %s1654_s28 }
  0x40   : > { %p99_p7 = scmp.eq.s32.totalorder %s1678_s11, 0  ;;  %s2318_s21 = smov (%p38_p1, %s37_s21), 0 }
  0x41   : > { %2287 = sst [smem:[#allocation23_spill]] %s2318_s21  ;;  %s2320_s19 = smov (!%p38_p1, %s40_s19), %s1674_s10 }
  0x42   : > { %s87_s13 = ssub.s32 %s1670_s9, %s2318_s21  ;;  %p1846_p9 = por %p99_p7, %p98_p3 }
  0x43   : > { %p42_p11 = scmp.ge.s32.totalorder %s2320_s19, 2  ;;  %p1319_p13 = scmp.lt.s32.totalorder %s1678_s11, 8 }
  0x44   : > { %s1852_s12 = sand.u32 1, %s1658_s29   ;;  %s1254_s27 = sshll.u32 %s1670_s9, 2 }
  0x45   : > { %s2322_s19 = smov (%p42_p11, %s2320_s19), 0  ;;  %s1253_s15 = sshll.u32 %s1852_s12, 5 }
  0x46   : > { %2289 = sst [smem:[#allocation24_spill]] %s2322_s19  ;;  %s86_s0 = ssub.s32 %s1674_s10, %s2322_s19 }
  0x47   : > { %s88_s1 = sor.u32 %s87_s13, %s86_s0  ;;  %p211_p2 = scmp.eq.s32.totalorder %s86_s0, 0 }
  0x48   : > { %p89_p5 = scmp.eq.s32.totalorder %s88_s1, 0  ;;  %s1255_s21 = sshll.u32 %s1674_s10, 4 }
  0x49   : > { %s2290_s18 = sadd.s32 1, %s1646_s26  ;;  %s288_s17 = sadd.s32 %s1255_s21, %s1254_s27 }
  0x4a   : > { %s1864_s24 = scalar_select %p211_p2, %s1646_s26, %s2290_s18  }
  0x4b   : > { %s1867_s7 = scalar_select %p89_p5, %s1658_s29, %s91_s20  }
  0x4c   : > { %s282_s9 = scalar_lea.vmem [#allocation9], %s1253_s15  ;;  %s1256_s5 = sshll.u32 %s288_s17, 7 }
  0x4d   : > { %s292_s6 = sshll.u32 %s282_s9, 4  ;;  %s1876_s19 = scalar_lea.hbm %s2248_s2, %s1256_s5  ;;  %s1871_s6 = int_to_ptr.vmem [resolvable:$true] %s292_s6 }
  0x4e   : > { %p1882_p6 = pnand %p1319_p13, %p1846_p9  ;;  %s1889_s17 = scalar_lea.hbm %s2249_s3, %s1256_s5 }
  0x4f   : > { %s279_s4 = scalar_lea.sflag [#allocation4], %s1852_s12  ;;  %s1484_s30 = scalar_lea.hbm %s1876_s19, 512 }
  0x50   : > { %p1485_p8 = scmp.ne.s32.totalorder %s1876_s19, %s1484_s30  ;;  %p1486_p10 = pneg %p1882_p6 }
  0x51   : > { %s1489_s20 = scalar_lea.hbm %s2248_s2, 4096  ;;  %p1490_p4 = scmp.lt.u32.totalorder %s1876_s19, %s2248_s2 }
  0x52   : > { %p1487_p12 = pnand %p1486_p10, %p1485_p8  ;;  %p1491_p1 = scmp.lt.u32.totalorder %s1489_s20, %s1484_s30 }
  0x53   : > { %p1493_p7 = scmp.lt.u32.totalorder %s1484_s30, %s1876_s19 }
  0x54   : > { %p1488_p0 = pneg %p1487_p12  ;;  %p1492_p3 = por %p1491_p1, %p1490_p4 }
  0x56   : > { %p1494_p9 = por %p1493_p7, %p1492_p3 }
  0x58   : > { %p1495_p11 = pnand %p1494_p9, %p1488_p0 }
  0x5a   : > { %1498 = shalt.err (!%p1495_p11)
}
  0x5b   : > { %s1499_s5 = scalar_lea.vmem %s1871_s6, 512  ;;  %s1682_s27 = smov [#allocation9]  }
  0x5c   : > { %p1500_p13 = scmp.ne.s32.totalorder %s1871_s6, %s1499_s5  ;;  %s1504_s1 = sshll.u32 %s1682_s27, 4  ;;  %s1505_s1 = int_to_ptr.vmem [resolvable:$false] %s1504_s1 }
  0x5d   : > { %s1506_s9 = scalar_lea.vmem %s1505_s1, 1024  ;;  %p1507_p8 = scmp.lt.s32.totalorder %s1871_s6, %s1505_s1 }
  0x5e   : > { %p1502_p2 = pnand %p1500_p13, %p1486_p10  ;;  %p1508_p12 = scmp.lt.s32.totalorder %s1506_s9, %s1499_s5 }
  0x60   : > { %p1503_p5 = pneg %p1502_p2  ;;  %p1509_p4 = por %p1508_p12, %p1507_p8 }
  0x62   : > { %p1510_p1 = pnand %p1509_p4, %p1503_p5 }
  0x64   : > { %1513 = shalt.err (!%p1510_p1)
}
  0x65   : > { %1309 = dma.hbm_to_vmem [thread:$0]  (!%p1882_p6), %s1876_s19, 512, %s1871_s6, %s279_s4  }
  0x66   : > { %s303_s30 = scalar_lea.vmem [#allocation10], %s1253_s15  ;;  %s300_s21 = scalar_lea.sflag [#allocation11], %s1852_s12 }
  0x67   : > { %s313_s18 = sshll.u32 %s303_s30, 4  ;;  %s1514_s20 = scalar_lea.hbm %s1889_s17, 512  ;;  %s314_s18 = int_to_ptr.vmem [resolvable:$true] %s313_s18 }
  0x68   : > { %p1515_p0 = scmp.ne.s32.totalorder %s1889_s17, %s1514_s20  ;;  %s1519_s5 = scalar_lea.hbm %s2249_s3, 4096 }
  0x69   : > { %p1520_p9 = scmp.lt.u32.totalorder %s1889_s17, %s2249_s3  ;;  %p1521_p11 = scmp.lt.u32.totalorder %s1519_s5, %s1514_s20 }
  0x6a   : > { %p1517_p3 = pnand %p1515_p0, %p1486_p10  ;;  %p1523_p2 = scmp.lt.u32.totalorder %s1514_s20, %s1889_s17 }
  0x6b   : > { %p1522_p13 = por %p1521_p11, %p1520_p9 }
  0x6c   : > { %p1518_p7 = pneg %p1517_p3 }
  0x6d   : > { %p1524_p5 = por %p1523_p2, %p1522_p13 }
  0x6f   : > { %p1525_p8 = pnand %p1524_p5, %p1518_p7 }
  0x71   : > { %1528 = shalt.err (!%p1525_p8)
}
  0x72   : > { %s1529_s6 = scalar_lea.vmem %s314_s18, 512  ;;  %s1683_s15 = smov [#allocation10]  }
  0x73   : > { %p1530_p12 = scmp.ne.s32.totalorder %s314_s18, %s1529_s6  ;;  %s1534_s19 = sshll.u32 %s1683_s15, 4  ;;  %s1535_s19 = int_to_ptr.vmem [resolvable:$false] %s1534_s19 }
  0x74   : > { %s1536_s12 = scalar_lea.vmem %s1535_s19, 1024  ;;  %p1537_p0 = scmp.lt.s32.totalorder %s314_s18, %s1535_s19 }
  0x75   : > { %p1532_p4 = pnand %p1530_p12, %p1486_p10  ;;  %p1538_p3 = scmp.lt.s32.totalorder %s1536_s12, %s1529_s6 }
  0x77   : > { %p1533_p1 = pneg %p1532_p4  ;;  %p1539_p9 = por %p1538_p3, %p1537_p0 }
  0x79   : > { %p1540_p11 = pnand %p1539_p9, %p1533_p1 }
  0x7b   : > { %1543 = shalt.err (!%p1540_p11)
}
  0x7c   : > { %1312 = dma.hbm_to_vmem [thread:$0]  (!%p1882_p6), %s1889_s17, 512, %s314_s18, %s300_s21  }
  0x7d   : > { %p2292_p7 = scmp.ne.s32.totalorder %s2284_s22, 0 }
  0x7e   : > { %p2293_p13 = scmp.ne.s32.totalorder (!%p2292_p7), %s2277_s14, 0 }
  0x7f   : > { %330 = sbr.rel (%p2292_p7) target bundleno = 716 (0x2cc), region = 48 }
  0x86   : > { %1617 = dma.done.wait (%p2293_p13), [#allocation6], 16  }
  0x87   : > { %1619 = vsyncadd (%p2293_p13), [#allocation6], 4294967280 }
  0x88   : > { %1621 = dma.done.wait (%p2293_p13), [#allocation8], 16  }
  0x89   : > { %1623 = vsyncadd (%p2293_p13), [#allocation8], 4294967280  ;;  %s340_s0 = sand.u32 1, %s1654_s28   ;;  %p2294_p6 = scmp.ne.s32.totalorder %s2278_s16, 0 }
  0x8a   : > { %s1264_s4 = sshll.u32 %s340_s0, 5  ;;  %s341_s17 = scalar_lea.sflag [#allocation4], %s340_s0 }
  0x8b   : > { %s1950_s9 = scalar_lea.vmem [#allocation9], %s1264_s4 }
  0x8c   : > { %1625 = dma.done.wait (%p2294_p6), %s341_s17, 512  }
  0x8d   : > { %1627 = vsyncadd (%p2294_p6), %s341_s17, 4294966784  ;;  %s350_s22 = scalar_lea.sflag [#allocation11], %s340_s0  ;;  %s1956_s30 = scalar_lea.vmem [#allocation10], %s1264_s4 }
  0x8e   : > { %1629 = dma.done.wait (%p2294_p6), %s350_s22, 512  }
  0x8f   : > { %1631 = vsyncadd (%p2294_p6), %s350_s22, 4294966784 }
  0x90   : > { %358 = sfence }
  0x91   : > { %s392_s14 = sand.u32 1, %s1642_s25   ;;  %p397_p10 = scmp.lt.s32.totalorder %s1666_s8, 1 }
  0x92   : > { %s1266_s18 = sshll.u32 %s392_s14, 3  ;;  %s2295_s5 = sld [smem:[#allocation27_spill]] }
  0x93   : > { %s398_s21 = scalar_select %p397_p10, %s1666_s8, 1 }
  0x94   : > { %s1972_s1 = scalar_lea.vmem [#allocation12], %s1266_s18  ;;  %s2296_s16 = sld [smem:[#allocation19_spill]] }
  0x95   : > { %s1284_s20 = sshll.u32 %s398_s21, 5 }
  0x98   : > { %s1970_s27 = scalar_lea.vmem %s2295_s5, %s1284_s20 }
  0x9a   : > { %p1269_p2 = scmp.ne.s32.totalorder %s2296_s16, 0 }
  0x9b   : > { %v1684_v0 = vmov (!%p1269_p2), 0.0  }
  0x9c   : > { %406 = sbr.rel (%p1269_p2) target bundleno = 163 (0xa3), region = 68  ;;  %407 = vst [vmem:[%s1972_s1] sm:$0xff] (!%p1269_p2), %v1684_v0 }
  0xa3 PF: > { %s408_s6 = sld [smem:[#allocation3 + %s1666_s8]]  ;;  %v1979_v1 = vld [vmem:[%s1950_s9 + $0x8] sm:$0xff]  ;;  %v1985_v3 = vld [vmem:[%s1950_s9 + $0x18] sm:$0xff]  ;;  %v1685_v5 = vmov 0   ;;  %v1991_v6 = vld [vmem:[%s1950_s9] sm:$0xff]  ;;  %vm469_vm0 = vcmask 1043456  }
  0xa4   : > { %s409_s15 = sld [smem:[#allocation7 + %s1666_s8]]  ;;  %v1982_v2 = vld [vmem:[%s1956_s30 + $0x8] sm:$0xff]  ;;  %v1988_v4 = vld [vmem:[%s1956_s30 + $0x18] sm:$0xff]  ;;  %514 = vmatprep.mubr.bf16.mxu0 %v1685_v5  ;;  %567 = vmatprep.mubr.bf16.mxu1 %v1685_v5  ;;  %v1994_v7 = vld [vmem:[%s1956_s30] sm:$0xff]  ;;  %vm462_vm1 = vcmask 64512   ;;  %vm845_vm2 = vcmask 261120  }
  0xa5   : > { %1418 = vset.pattern.permute.xlu0 %v1685_v5  ;;  %1419 = vset.pattern.permute.xlu1 %v1685_v5  ;;  %v620_v8 = vld [vmem:[%s1970_s27] sm:$0xff]  ;;  %v1998_v9 = vld [vmem:[%s1950_s9 + $0x10] sm:$0xff]  ;;  %v621_v14 = vld [vmem:[%s1970_s27 + $0x8] sm:$0xff]  ;;  %s2297_s0 = sld [smem:[#allocation28_spill]]  ;;  %vm1072_vm3 = vcmask 1041409   ;;  %vm1074_vm4 = vcmask 1042434  }
  0xa6   : > { %v2001_v10 = vld [vmem:[%s1956_s30 + $0x10] sm:$0xff]  ;;  %626 = vperm.xlu0 %1418, %v620_v8   ;;  %v623_v19 = vld [vmem:[%s1970_s27 + $0x18] sm:$0xff]  ;;  %s2298_s30 = sld [smem:[#allocation29_spill]]  ;;  %vm1076_vm5 = vcmask 1043459   ;;  %vm1078_vm6 = vcmask 1044484   ;;  %vm1080_vm7 = vcmask 1045509  }
  0xa7   : > { %v622_v11 = vld [vmem:[%s1970_s27 + $0x10] sm:$0xff]  ;;  %vm1082_vm8 = vcmask 1046534   ;;  %s2299_s18 = sld [smem:[#allocation21_spill]]  ;;  %vm1084_vm9 = vcmask 1047559   ;;  %s1281_s21 = sshll.u32 %s1666_s8, 7 }
  0xa8   : > { %636 = vperm.xlu1 %1419, %v622_v11   ;;  %s1103_s20 = sshll.u32 %s1972_s1, 4  ;;  %s2300_s5 = sld [smem:[#allocation30_spill]]  ;;  %s2183_s20 = int_to_ptr.vmem [resolvable:$true] %s1103_s20 }
  0xa9   : > { %v2004_v12 = vstv %s408_s6  ;;  %s1090_s16 = scalar_lea.sflag [#allocation5], %s392_s14  ;;  %s1544_s6 = scalar_lea.vmem %s2183_s20, 128 }
  0xaa   : > { %v2006_v13 = vstv %s409_s15  ;;  %v420_v15 = vmul.f32 %v2004_v12, %v1979_v1  ;;  %v422_v17 = vmul.f32 %v2004_v12, %v1985_v3  ;;  %v419_v20 = vmul.f32 %v2004_v12, %v1991_v6  ;;  %631 = vperm.xlu0 %1418, %v621_v14   ;;  %p1545_p5 = scmp.ne.s32.totalorder %s2183_s20, %s1544_s6  ;;  %s1689_s8 = smov [#allocation12]  }
  0xab   : > { %v425_v16 = vmul.f32 %v2006_v13, %v1982_v2  ;;  %v427_v18 = vmul.f32 %v2006_v13, %v1988_v4  ;;  %v424_v21 = vmul.f32 %v2006_v13, %v1994_v7  ;;  %v421_v22 = vmul.f32 %v2004_v12, %v1998_v9  ;;  %v1420_v34 = vld [vmem:[%s2297_s0] sm:$0xff]   ;;  %v1421_v35 = vld [vmem:[%s2297_s0 + $0x8] sm:$0xff]   ;;  %s1548_s15 = sshll.u32 %s1689_s8, 4  ;;  %s1549_s15 = int_to_ptr.vmem [resolvable:$false] %s1548_s15 }
  0xac   : > { %v426_v23 = vmul.f32 %v2006_v13, %v2001_v10  ;;  %641 = vperm.xlu1 %1419, %v623_v19   ;;  %s1550_s19 = scalar_lea.vmem %s1549_s15, 256  ;;  %p1551_p1 = scmp.lt.s32.totalorder %s2183_s20, %s1549_s15 }
  0xad   : > { %v429_v24 = vadd.f32 %v425_v16, %v420_v15  ;;  %v431_v25 = vadd.f32 %v427_v18, %v422_v17  ;;  %v428_v26 = vadd.f32 %v424_v21, %v419_v20  ;;  %p2301_p8 = scmp.ne.s32.totalorder %s2299_s18, 0  ;;  %p1552_p0 = scmp.lt.s32.totalorder %s1550_s19, %s1544_s6 }
  0xae   : > { %v430_v27 = vadd.f32 %v426_v23, %v421_v22  ;;  %s2181_s27 = scalar_lea.hbm %s2300_s5, %s1281_s21 }
  0xaf   : > { %v449_v28 = vpack.c.bf16 %v429_v24, %v429_v24  ;;  %v451_v29 = vpack.c.bf16 %v431_v25, %v431_v25  ;;  %v448_v30 = vpack.c.bf16 %v428_v26, %v428_v26  ;;  %p1546_p12 = pnand %p1545_p5, %p2301_p8  ;;  %p1553_p3 = por %p1552_p0, %p1551_p1 }
  0xb0   : > { %v450_v31 = vpack.c.bf16 %v430_v27, %v430_v27 }
  0xb1   : > { %1272 = vmatprep.subr.msk.bf16.mxu0 %vm469_vm0, %v449_v28  ;;  %1275 = vmatprep.subr.msk.bf16.mxu1 %vm469_vm0, %v451_v29  ;;  %v471_v32 = vsel %vm469_vm0, %v448_v30, 0  ;;  %p1547_p4 = pneg %p1546_p12 }
  0xb2   : > { %v477_v33 = vsel %vm469_vm0, %v450_v31, 0  ;;  %483 = vmatpush1.bf16.msra.mxu0 %v471_v32 }
  0xb3   : > { %536 = vmatpush1.bf16.msra.mxu1 %v477_v33  ;;  %p1554_p9 = pnand %p1553_p3, %p1547_p4 }
  0xb5   : > { %1273 = vmatmul.mubr.msk.bf16.vlgmr.msra.gmra.mrb[0].mxu0 %vm462_vm1, %v1420_v34 }
  0xb6   : > { %1276 = vmatmul.mubr.msk.bf16.vlgmr.msra.gmra.mrb[0].mxu1 %vm462_vm1, %v1420_v34  ;;  %524 = vmatprep.mubr.bf16.mxu0 %v1685_v5 }
  0xb7   : > { %577 = vmatprep.mubr.bf16.mxu1 %v1685_v5 }
  0xbd   : > { %1274 = vmatmul.mubr.msk.bf16.gmra.mrb[4].mxu0 %vm462_vm1, %v1421_v35 }
  0xbe   : > { %1277 = vmatmul.mubr.msk.bf16.gmra.mrb[4].mxu1 %vm462_vm1, %v1421_v35  ;;  %881 = vmatprep.mubr.bf16.mxu0 %v1685_v5 }
  0xbf   : > { %922 = vmatprep.mubr.bf16.mxu1 %v1685_v5 }
 0x125   : > { %v627_v36 = vpop.permute.xlu0 %626 }
 0x127   : > { %v637_v16 = vpop.permute.xlu1 %636 }
 0x129   : > { %v632_v37 = vpop.permute.xlu0 %631 }
 0x188   : > { %v516_v38 = vpop.f32.mrb[0].mxu0 }
 0x189   : > { %v569_v39 = vpop.f32.mrb[0].mxu1  ;;  %v2036_v40 = vadd.f32 %v627_v36, %v516_v38  ;;  %v518_v42 = vpop.f32.mrb[1].mxu0 }
 0x18a   : > { %v2038_v41 = vadd.f32 %v627_v36, %v569_v39  ;;  %v571_v43 = vpop.f32.mrb[1].mxu1  ;;  %v2040_v44 = vadd.f32 %v627_v36, %v518_v42  ;;  %v520_v46 = vpop.f32.mrb[2].mxu0 }
 0x18b   : > { %v2042_v45 = vadd.f32 %v627_v36, %v571_v43  ;;  %v573_v47 = vpop.f32.mrb[2].mxu1  ;;  %v660_v48 = vmul.f32 %v2036_v40, %v2036_v40  ;;  %v2048_v50 = vadd.f32 %v632_v37, %v520_v46  ;;  %v522_v52 = vpop.f32.mrb[3].mxu0 }
 0x18c   : > { %v662_v49 = vmul.f32 %v2038_v41, %v2038_v41  ;;  %v2050_v51 = vadd.f32 %v632_v37, %v573_v47  ;;  %v575_v53 = vpop.f32.mrb[3].mxu1  ;;  %v661_v54 = vmul.f32 %v2040_v44, %v2040_v44  ;;  %v2056_v56 = vadd.f32 %v632_v37, %v522_v52 }
 0x18d   : > { %v663_v55 = vmul.f32 %v2042_v45, %v2042_v45  ;;  %v2058_v57 = vadd.f32 %v632_v37, %v575_v53  ;;  %v676_v58 = vmul.f32 %v660_v48, %v2036_v40  ;;  %v664_v60 = vmul.f32 %v2048_v50, %v2048_v50 }
 0x18e   : > { %v678_v59 = vmul.f32 %v662_v49, %v2038_v41  ;;  %v666_v61 = vmul.f32 %v2050_v51, %v2050_v51  ;;  %v677_v62 = vmul.f32 %v661_v54, %v2040_v44  ;;  %v665_v0 = vmul.f32 %v2056_v56, %v2056_v56 }
 0x18f   : > { %v679_v63 = vmul.f32 %v663_v55, %v2042_v45  ;;  %v667_v5 = vmul.f32 %v2058_v57, %v2058_v57  ;;  %v692_v8 = vmul.f32 0.044715, %v676_v58  ;;  %v680_v14 = vmul.f32 %v664_v60, %v2048_v50 }
 0x190   : > { %v694_v11 = vmul.f32 0.044715, %v678_v59  ;;  %v682_v15 = vmul.f32 %v666_v61, %v2050_v51  ;;  %v693_v17 = vmul.f32 0.044715, %v677_v62  ;;  %v681_v19 = vmul.f32 %v665_v0, %v2056_v56  ;;  %v526_v21 = vpop.f32.mrb[4].mxu0  ;;  %v642_v59 = vpop.permute.xlu1 %641 }
 0x191   : > { %v695_v18 = vmul.f32 0.044715, %v679_v63  ;;  %v683_v20 = vmul.f32 %v667_v5, %v2058_v57  ;;  %v579_v22 = vpop.f32.mrb[4].mxu1  ;;  %v708_v23 = vadd.f32 %v692_v8, %v2036_v40  ;;  %v696_v25 = vmul.f32 0.044715, %v680_v14  ;;  %v528_v27 = vpop.f32.mrb[5].mxu0 }
 0x192   : > { %v710_v24 = vadd.f32 %v694_v11, %v2038_v41  ;;  %v698_v26 = vmul.f32 0.044715, %v682_v15  ;;  %v581_v28 = vpop.f32.mrb[5].mxu1  ;;  %v709_v29 = vadd.f32 %v693_v17, %v2040_v44  ;;  %v697_v31 = vmul.f32 0.044715, %v681_v19  ;;  %v530_v33 = vpop.f32.mrb[6].mxu0 }
 0x193   : > { %v711_v30 = vadd.f32 %v695_v18, %v2042_v45  ;;  %v699_v32 = vmul.f32 0.044715, %v683_v20  ;;  %v583_v34 = vpop.f32.mrb[6].mxu1  ;;  %v724_v35 = vmul.f32 0.7978846, %v708_v23  ;;  %v712_v37 = vadd.f32 %v696_v25, %v2048_v50  ;;  %v532_v39 = vpop.f32.mrb[7].mxu0 }
 0x194   : > { %v726_v36 = vmul.f32 0.7978846, %v710_v24  ;;  %v714_v38 = vadd.f32 %v698_v26, %v2050_v51  ;;  %v585_v42 = vpop.f32.mrb[7].mxu1  ;;  %v725_v43 = vmul.f32 0.7978846, %v709_v29  ;;  %v713_v47 = vadd.f32 %v697_v31, %v2056_v56 }
 0x195   : > { %v727_v46 = vmul.f32 0.7978846, %v711_v30  ;;  %v715_v48 = vadd.f32 %v699_v32, %v2058_v57  ;;  %1422 = vtanh.f32 %v724_v35  ;;  %v728_v49 = vmul.f32 0.7978846, %v712_v37 }
 0x196   : > { %v730_v52 = vmul.f32 0.7978846, %v714_v38  ;;  %v2084_v53 = vadd.f32 %v637_v16, %v526_v21  ;;  %1424 = vtanh.f32 %v726_v36  ;;  %v729_v54 = vmul.f32 0.7978846, %v713_v47 }
 0x197   : > { %v731_v55 = vmul.f32 0.7978846, %v715_v48  ;;  %v2086_v58 = vadd.f32 %v637_v16, %v579_v22  ;;  %1426 = vtanh.f32 %v725_v43  ;;  %v2090_v61 = vadd.f32 %v637_v16, %v528_v27 }
 0x198   : > { %v668_v60 = vmul.f32 %v2084_v53, %v2084_v53  ;;  %v2092_v62 = vadd.f32 %v637_v16, %v581_v28  ;;  %1428 = vtanh.f32 %v727_v46  ;;  %v2096_v0 = vadd.f32 %v642_v59, %v530_v33 }
 0x199   : > { %v670_v63 = vmul.f32 %v2086_v58, %v2086_v58  ;;  %v2098_v5 = vadd.f32 %v642_v59, %v583_v34  ;;  %1430 = vtanh.f32 %v728_v49  ;;  %v669_v11 = vmul.f32 %v2090_v61, %v2090_v61 }
 0x19a   : > { %v684_v8 = vmul.f32 %v668_v60, %v2084_v53  ;;  %v671_v14 = vmul.f32 %v2092_v62, %v2092_v62  ;;  %1432 = vtanh.f32 %v730_v52  ;;  %v672_v16 = vmul.f32 %v2096_v0, %v2096_v0 }
 0x19b   : > { %v686_v15 = vmul.f32 %v670_v63, %v2086_v58  ;;  %v674_v17 = vmul.f32 %v2098_v5, %v2098_v5  ;;  %1434 = vtanh.f32 %v729_v54  ;;  %v685_v19 = vmul.f32 %v669_v11, %v2090_v61 }
 0x19c   : > { %v700_v18 = vmul.f32 0.044715, %v684_v8  ;;  %v687_v20 = vmul.f32 %v671_v14, %v2092_v62  ;;  %1436 = vtanh.f32 %v731_v55  ;;  %v688_v22 = vmul.f32 %v672_v16, %v2096_v0 }
 0x19d   : > { %v702_v21 = vmul.f32 0.044715, %v686_v15  ;;  %v690_v23 = vmul.f32 %v674_v17, %v2098_v5  ;;  %v701_v25 = vmul.f32 0.044715, %v685_v19  ;;  %v2115_v27 = vadd.f32 %v642_v59, %v532_v39 }
 0x19e   : > { %v716_v24 = vadd.f32 %v700_v18, %v2084_v53  ;;  %v703_v26 = vmul.f32 0.044715, %v687_v20  ;;  %v704_v29 = vmul.f32 0.044715, %v688_v22  ;;  %v2118_v31 = vadd.f32 %v642_v59, %v585_v42 }
 0x19f   : > { %v718_v28 = vadd.f32 %v702_v21, %v2086_v58  ;;  %v706_v30 = vmul.f32 0.044715, %v690_v23  ;;  %v1423_v32 = vpop.eup %1422  ;;  %v717_v34 = vadd.f32 %v701_v25, %v2090_v61  ;;  %v673_v36 = vmul.f32 %v2115_v27, %v2115_v27 }
 0x1a0   : > { %v732_v33 = vmul.f32 0.7978846, %v716_v24  ;;  %v719_v35 = vadd.f32 %v703_v26, %v2092_v62  ;;  %v1425_v37 = vpop.eup %1424  ;;  %v756_v38 = vadd.f32 1.0, %v1423_v32  ;;  %v720_v39 = vadd.f32 %v704_v29, %v2096_v0 }
 0x1a1   : > { %v734_v43 = vmul.f32 0.7978846, %v718_v28  ;;  %v722_v46 = vadd.f32 %v706_v30, %v2098_v5  ;;  %v1427_v47 = vpop.eup %1426  ;;  %v758_v48 = vadd.f32 1.0, %v1425_v37  ;;  %v733_v42 = vmul.f32 0.7978846, %v717_v34 }
 0x1a2   : > { %1438 = vtanh.f32 %v732_v33  ;;  %v735_v49 = vmul.f32 0.7978846, %v719_v35  ;;  %v1429_v52 = vpop.eup %1428  ;;  %v772_v54 = vmul.f32 0.5, %v756_v38  ;;  %v736_v55 = vmul.f32 0.7978846, %v720_v39 }
 0x1a3   : > { %1440 = vtanh.f32 %v734_v43  ;;  %v738_v59 = vmul.f32 0.7978846, %v722_v46  ;;  %v1431_v60 = vpop.eup %1430  ;;  %v774_v63 = vmul.f32 0.5, %v758_v48  ;;  %v689_v8 = vmul.f32 %v673_v36, %v2115_v27 }
 0x1a4   : > { %1442 = vtanh.f32 %v733_v42  ;;  %v675_v11 = vmul.f32 %v2118_v31, %v2118_v31  ;;  %v1433_v14 = vpop.eup %1432  ;;  %v788_v15 = vmul.f32 %v772_v54, %v2036_v40  ;;  %v760_v16 = vadd.f32 1.0, %v1431_v60 }
 0x1a5   : > { %1444 = vtanh.f32 %v735_v49  ;;  %v757_v17 = vadd.f32 1.0, %v1427_v47  ;;  %v1435_v18 = vpop.eup %1434  ;;  %v790_v19 = vmul.f32 %v774_v63, %v2038_v41  ;;  %v762_v20 = vadd.f32 1.0, %v1433_v14 }
 0x1a6   : > { %1446 = vtanh.f32 %v736_v55  ;;  %v705_v21 = vmul.f32 0.044715, %v689_v8  ;;  %v1437_v22 = vpop.eup %1436  ;;  %v776_v23 = vmul.f32 0.5, %v760_v16  ;;  %v691_v24 = vmul.f32 %v675_v11, %v2118_v31 }
 0x1a7   : > { %1448 = vtanh.f32 %v738_v59  ;;  %v761_v25 = vadd.f32 1.0, %v1435_v18  ;;  %v778_v26 = vmul.f32 0.5, %v762_v20  ;;  %v773_v29 = vmul.f32 0.5, %v757_v17 }
 0x1a8   : > { %v721_v28 = vadd.f32 %v705_v21, %v2115_v27  ;;  %v759_v40 = vadd.f32 1.0, %v1429_v52  ;;  %v792_v30 = vmul.f32 %v776_v23, %v2048_v50  ;;  %v707_v32 = vmul.f32 0.044715, %v691_v24 }
 0x1a9   : > { %v777_v33 = vmul.f32 0.5, %v761_v25  ;;  %v763_v34 = vadd.f32 1.0, %v1437_v22  ;;  %v794_v41 = vmul.f32 %v778_v26, %v2050_v51  ;;  %v789_v36 = vmul.f32 %v773_v29, %v2040_v44 }
 0x1aa   : > { %v737_v35 = vmul.f32 0.7978846, %v721_v28  ;;  %v775_v37 = vmul.f32 0.5, %v759_v40  ;;  %v723_v38 = vadd.f32 %v707_v32, %v2118_v31  ;;  %v837_v46 = vpack.c.bf16 %v792_v30, %v788_v15 }
 0x1ab   : > { %v793_v43 = vmul.f32 %v777_v33, %v2056_v56  ;;  %v779_v39 = vmul.f32 0.5, %v763_v34  ;;  %v839_v50 = vpack.c.bf16 %v794_v41, %v790_v19  ;;  %v820_v41 = vld [vmem:[%s2298_s30] sm:$0xf] }
 0x1ac   : > { %v1439_v47 = vpop.eup %1438  ;;  %1450 = vtanh.f32 %v737_v35  ;;  %v791_v48 = vmul.f32 %v775_v37, %v2042_v45  ;;  %v739_v52 = vmul.f32 0.7978846, %v723_v38  ;;  %v434_v35 = vmul.f32 %v2004_v12, %v2001_v10 }
 0x1ad   : > { %v1441_v42 = vpop.eup %1440  ;;  %v764_v49 = vadd.f32 1.0, %v1439_v47  ;;  %v838_v54 = vpack.c.bf16 %v793_v43, %v789_v36  ;;  %v795_v51 = vmul.f32 %v779_v39, %v2058_v57  ;;  %v438_v36 = vmul.f32 %v2006_v13, %v1998_v9 }
 0x1ae   : > { %v1443_v55 = vpop.eup %1442  ;;  %v766_v44 = vadd.f32 1.0, %v1441_v42  ;;  %1452 = vtanh.f32 %v739_v52  ;;  %v435_v38 = vmul.f32 %v2004_v12, %v1988_v4  ;;  %v945_v39 = vlaneseq }
 0x1af   : > { %v1445_v59 = vpop.eup %1444  ;;  %849 = vmatprep.subr.bf16.mxu0 %v838_v54  ;;  %v840_v60 = vpack.c.bf16 %v795_v51, %v791_v48  ;;  %v780_v8 = vmul.f32 0.5, %v764_v49  ;;  %v765_v16 = vadd.f32 1.0, %v1443_v55  ;;  %v442_v47 = vsub.f32 %v434_v35, %v438_v36 }
 0x1b0   : > { %v1447_v56 = vpop.eup %1446  ;;  %850 = vmatpush1.bf16.msra.mxu0 %v837_v46  ;;  %v782_v45 = vmul.f32 0.5, %v766_v44  ;;  %v767_v22 = vadd.f32 1.0, %v1445_v59  ;;  %v946_v42 = vshrl.u32 %v945_v39, 7  ;;  %v1687_v54 = vmov 1934713408  }
 0x1b1   : > { %v1449_v63 = vpop.eup %1448  ;;  %v768_v11 = vadd.f32 1.0, %v1447_v56  ;;  %890 = vmatprep.subr.bf16.mxu1 %v840_v60  ;;  %v796_v57 = vmul.f32 %v780_v8, %v2084_v53  ;;  %v781_v24 = vmul.f32 0.5, %v765_v16  ;;  %v975_v51 = vunpack.c.l.s4 %v1687_v54 }
 0x1b2   : > { %v770_v14 = vadd.f32 1.0, %v1449_v63  ;;  %891 = vmatpush1.bf16.msra.mxu1 %v839_v50  ;;  %v798_v20 = vmul.f32 %v782_v45, %v2086_v58  ;;  %v783_v30 = vmul.f32 0.5, %v767_v22 }
 0x1b3   : > { %v784_v15 = vmul.f32 0.5, %v768_v11  ;;  %v797_v32 = vmul.f32 %v781_v24, %v2090_v61  ;;  %v432_v61 = vmul.f32 %v2004_v12, %v1994_v7  ;;  %v439_v7 = vmul.f32 %v2006_v13, %v1985_v3 }
 0x1b4   : > { %v786_v17 = vmul.f32 0.5, %v770_v14  ;;  %v799_v34 = vmul.f32 %v783_v30, %v2092_v62  ;;  %v436_v62 = vmul.f32 %v2006_v13, %v1991_v6  ;;  %v1686_v6 = vmov 1983009808  }
 0x1b5   : > { %v800_v18 = vmul.f32 %v784_v15, %v2096_v0  ;;  %v943_v43 = vunpack.c.l.s4 %v1686_v6  ;;  %v443_v50 = vsub.f32 %v435_v38, %v439_v7  ;;  %v976_v11 = vunpack.c.0.s8 %v975_v51 }
 0x1b6   : > { %v1451_v19 = vpop.eup %1450  ;;  %v802_v21 = vmul.f32 %v786_v17, %v2098_v5  ;;  %v440_v37 = vsub.f32 %v432_v61, %v436_v62 }
 0x1b7   : > { %v769_v23 = vadd.f32 1.0, %v1451_v19  ;;  %v841_v25 = vpack.c.bf16 %v800_v18, %v796_v57  ;;  %v944_v10 = vunpack.c.0.s8 %v943_v43 }
 0x1b8   : > { %v843_v26 = vpack.c.bf16 %v802_v21, %v798_v20  ;;  %v1453_v28 = vpop.eup %1452  ;;  %v979_v20 = vsub.s32 %v976_v11, %v946_v42 }
 0x1b9   : > { %v785_v29 = vmul.f32 0.5, %v769_v23  ;;  %v771_v40 = vadd.f32 1.0, %v1453_v28  ;;  %v947_v56 = vsub.s32 %v944_v10, %v946_v42 }
 0x1bb   : > { %v801_v53 = vmul.f32 %v785_v29, %v2115_v27  ;;  %v787_v33 = vmul.f32 0.5, %v771_v40  ;;  %v433_v27 = vmul.f32 %v2004_v12, %v1982_v2  ;;  %v1688_v40 = vmov 0.0  }
 0x1bd   : > { %v842_v0 = vpack.c.bf16 %v801_v53, %v797_v32  ;;  %v803_v58 = vmul.f32 %v787_v33, %v2118_v31  ;;  %v437_v31 = vmul.f32 %v2006_v13, %v1979_v1 }
 0x1bf   : > { %851 = vmatprep.subr.bf16.mxu0 %v842_v0  ;;  %v844_v5 = vpack.c.bf16 %v803_v58, %v799_v34  ;;  %v441_v2 = vsub.f32 %v433_v27, %v437_v31 }
 0x1c0   : > { %852 = vmatpush1.bf16.msra.mxu0 %v841_v25 }
 0x1c1   : > { %892 = vmatprep.subr.bf16.mxu1 %v844_v5 }
 0x1c2   : > { %893 = vmatpush1.bf16.msra.mxu1 %v843_v26 }
 0x1c3   : > { %1278 = vmatmul.mubr.msk.bf16.vlgmr.msra.gmra.mrb[8].mxu0 %vm845_vm2, %v820_v41 }
 0x1c5   : > { %1279 = vmatmul.mubr.msk.bf16.vlgmr.msra.gmra.mrb[8].mxu1 %vm845_vm2, %v820_v41 }
 0x296   : > { %v883_v46 = vpop.f32.mrb[8].mxu0 }
 0x297   : > { %v931_v1 = vsub.f32 %v883_v46, %v440_v37  ;;  %v885_v48 = vpop.f32.mrb[9].mxu0 }
 0x298   : > { %v932_v49 = vsub.f32 %v885_v48, %v441_v2  ;;  %v887_v9 = vpop.f32.mrb[10].mxu0  ;;  %v924_v52 = vpop.f32.mrb[8].mxu1 }
 0x299   : > { %v888_v4 = vpop.f32.mrb[11].mxu0  ;;  %v935_v12 = vmul.f32 %v931_v1, %v931_v1  ;;  %v933_v55 = vsub.f32 %v924_v52, %v442_v47  ;;  %v926_v3 = vpop.f32.mrb[9].mxu1 }
 0x29a   : > { %v936_v13 = vmul.f32 %v932_v49, %v932_v49  ;;  %v934_v44 = vsub.f32 %v926_v3, %v443_v50  ;;  %v928_v59 = vpop.f32.mrb[10].mxu1 }
 0x29b   : > { %v937_v60 = vmul.f32 %v933_v55, %v933_v55  ;;  %v929_v63 = vpop.f32.mrb[11].mxu1 }
 0x29c   : > { %v938_v8 = vmul.f32 %v934_v44, %v934_v44 }
 0x29d   : > { %v940_v45 = vcombine.low %v935_v12, %v937_v60  ;;  %v941_v14 = vcombine.high %v935_v12, %v937_v60 }
 0x29e   : > { %v956_v15 = vcombine.low %v936_v13, %v938_v8  ;;  %v957_v16 = vcombine.high %v936_v13, %v938_v8 }
 0x29f   : > { %v948_v17 = vrot.slane %v940_v45, %v947_v56  ;;  %v955_v57 = vrot.slane %v941_v14, %v947_v56 }
 0x2a0   : > { %v964_v18 = vrot.slane %v956_v15, %v947_v56  ;;  %v971_v19 = vrot.slane %v957_v16, %v947_v56 }
 0x2a2   : > { %v972_v21 = vcombine.low %v948_v17, %v964_v18  ;;  %v973_v22 = vcombine.high %v948_v17, %v964_v18  ;;  %v988_v23 = vcombine.low %v955_v57, %v971_v19  ;;  %v989_v24 = vcombine.high %v955_v57, %v971_v19 }
 0x2a4   : > { %v980_v25 = vrot.slane %v972_v21, %v979_v20  ;;  %v987_v26 = vrot.slane %v973_v22, %v979_v20  ;;  %v996_v28 = vrot.slane %v988_v23, %v979_v20  ;;  %v1003_v29 = vrot.slane %v989_v24, %v979_v20 }
 0x2a6   : > { %v1004_v30 = vcombine.high %v980_v25, %v1688_v40  ;;  %v1005_v32 = vcombine.high %v987_v26, %v1688_v40  ;;  %v1006_v53 = vcombine.high %v996_v28, %v1688_v40  ;;  %v1007_v33 = vcombine.high %v1003_v29, %v1688_v40  ;;  %v939_v40 = vld [vmem:[%s1972_s1] sm:$0xff] }
 0x2a7   : > { %v1008_v0 = vsel %vm469_vm0, %v980_v25, 0.0  ;;  %v1022_v34 = vsel %vm469_vm0, %v987_v26, 0.0  ;;  %v1036_v58 = vsel %vm469_vm0, %v996_v28, 0.0  ;;  %v1050_v5 = vsel %vm469_vm0, %v1003_v29, 0.0 }
 0x2a8   : > { %v1009_v41 = vrot.slane %v1008_v0, 4  ;;  %v1015_v61 = vsel %vm469_vm0, %v1004_v30, 0.0  ;;  %v1023_v62 = vrot.slane %v1022_v34, 4  ;;  %v1029_v27 = vsel %vm469_vm0, %v1005_v32, 0.0 }
 0x2a9   : > { %v1016_v31 = vrot.slane %v1015_v61, 4  ;;  %v1030_v35 = vrot.slane %v1029_v27, 4  ;;  %v1037_v36 = vrot.slane %v1036_v58, 4  ;;  %v1043_v37 = vsel %vm469_vm0, %v1006_v53, 0.0 }
 0x2aa   : > { %v1010_v38 = vadd.f32 %v1009_v41, %v1008_v0  ;;  %v1024_v7 = vadd.f32 %v1023_v62, %v1022_v34  ;;  %v1044_v6 = vrot.slane %v1043_v37, 4  ;;  %v1051_v43 = vrot.slane %v1050_v5, 4 }
 0x2ab   : > { %v1017_v39 = vadd.f32 %v1016_v31, %v1015_v61  ;;  %v1031_v2 = vadd.f32 %v1030_v35, %v1029_v27  ;;  %v1038_v46 = vadd.f32 %v1037_v36, %v1036_v58  ;;  %v1057_v47 = vsel %vm469_vm0, %v1007_v33, 0.0 }
 0x2ac   : > { %v1011_v1 = vrot.slane %v1010_v38, 2  ;;  %v1025_v48 = vrot.slane %v1024_v7, 2  ;;  %v1045_v50 = vadd.f32 %v1044_v6, %v1043_v37  ;;  %v1052_v10 = vadd.f32 %v1051_v43, %v1050_v5 }
 0x2ad   : > { %v1018_v42 = vrot.slane %v1017_v39, 2  ;;  %v1032_v49 = vrot.slane %v1031_v2, 2  ;;  %v1039_v9 = vrot.slane %v1038_v46, 2  ;;  %v1058_v52 = vrot.slane %v1057_v47, 4 }
 0x2ae   : > { %v1012_v54 = vadd.f32 %v1011_v1, %v1010_v38  ;;  %v1026_v51 = vadd.f32 %v1025_v48, %v1024_v7  ;;  %v1046_v4 = vrot.slane %v1045_v50, 2  ;;  %v1053_v12 = vrot.slane %v1052_v10, 2 }
 0x2af   : > { %v1019_v55 = vadd.f32 %v1018_v42, %v1017_v39  ;;  %v1033_v3 = vadd.f32 %v1032_v49, %v1031_v2  ;;  %v1040_v13 = vadd.f32 %v1039_v9, %v1038_v46  ;;  %v1059_v44 = vadd.f32 %v1058_v52, %v1057_v47 }
 0x2b0   : > { %v1013_v59 = vrot.slane %v1012_v54, 1  ;;  %v1027_v60 = vrot.slane %v1026_v51, 1  ;;  %v1047_v56 = vadd.f32 %v1046_v4, %v1045_v50  ;;  %v1054_v63 = vadd.f32 %v1053_v12, %v1052_v10 }
 0x2b1   : > { %v1020_v8 = vrot.slane %v1019_v55, 1  ;;  %v1034_v11 = vrot.slane %v1033_v3, 1  ;;  %v1060_v45 = vrot.slane %v1059_v44, 2  ;;  %v1041_v14 = vrot.slane %v1040_v13, 1 }
 0x2b2   : > { %v1014_v15 = vadd.f32 %v1013_v59, %v1012_v54  ;;  %v1048_v17 = vrot.slane %v1047_v56, 1  ;;  %v1028_v18 = vadd.f32 %v1027_v60, %v1026_v51  ;;  %v1055_v19 = vrot.slane %v1054_v63, 1 }
 0x2b3   : > { %v1021_v16 = vadd.f32 %v1020_v8, %v1019_v55  ;;  %v1061_v57 = vadd.f32 %v1060_v45, %v1059_v44  ;;  %v1035_v20 = vadd.f32 %v1034_v11, %v1033_v3  ;;  %v1042_v23 = vadd.f32 %v1041_v14, %v1040_v13 }
 0x2b4   : > { %v1049_v25 = vadd.f32 %v1048_v17, %v1047_v56  ;;  %v1056_v28 = vadd.f32 %v1055_v19, %v1054_v63 }
 0x2b5   : > { %v1062_v21 = vrot.slane %v1061_v57, 1  ;;  %v1073_v22 = vsel %vm1072_vm3, %v1021_v16, %v1014_v15 }
 0x2b6   : > { %v1075_v24 = vsel %vm1074_vm4, %v1028_v18, %v1073_v22 }
 0x2b7   : > { %v1077_v26 = vsel %vm1076_vm5, %v1035_v20, %v1075_v24  ;;  %v1063_v30 = vadd.f32 %v1062_v21, %v1061_v57 }
 0x2b8   : > { %v1079_v29 = vsel %vm1078_vm6, %v1042_v23, %v1077_v26 }
 0x2b9   : > { %v1081_v32 = vsel %vm1080_vm7, %v1049_v25, %v1079_v29 }
 0x2ba   : > { %v1083_v53 = vsel %vm1082_vm8, %v1056_v28, %v1081_v32 }
 0x2bb   : > { %v1085_v33 = vsel %vm1084_vm9, %v1063_v30, %v1083_v53 }
 0x2bc   : > { %v1087_v0 = vadd.f32 %v1085_v33, %v939_v40 }
 0x2be   : > { %1088 = vst [vmem:[%s1972_s1] sm:$0xff] %v1087_v0 }
 0x2bf   : > { %1557 = shalt.err (!%p1554_p9)
}
 0x2c0   : > { %s1558_s14 = scalar_lea.hbm %s2181_s27, 128  ;;  %s1562_s4 = scalar_lea.hbm %s2300_s5, 256 }
 0x2c1   : > { %p1559_p11 = scmp.ne.s32.totalorder %s2181_s27, %s1558_s14  ;;  %p1563_p6 = scmp.lt.u32.totalorder %s2181_s27, %s2300_s5 }
 0x2c2   : > { %p1564_p10 = scmp.lt.u32.totalorder %s1562_s4, %s1558_s14  ;;  %p1566_p5 = scmp.lt.u32.totalorder %s1558_s14, %s2181_s27 }
 0x2c3   : > { %p1560_p7 = pnand %p1559_p11, %p2301_p8 }
 0x2c4   : > { %p1565_p2 = por %p1564_p10, %p1563_p6 }
 0x2c5   : > { %p1561_p13 = pneg %p1560_p7 }
 0x2c6   : > { %p1567_p12 = por %p1566_p5, %p1565_p2 }
 0x2c8   : > { %p1568_p4 = pnand %p1567_p12, %p1561_p13 }
 0x2ca   : > { %1571 = shalt.err (!%p1568_p4)
}
 0x2cb   : > { %1297 = dma.vmem_to_hbm [thread:$0]  (%p2301_p8), %s2183_s20, 128, %s2181_s27, %s1090_s16  }
 0x2cc PF: > { %s2302_s22 = sld [smem:[#allocation18_spill]]  ;;  %s2303_s30 = sld [smem:[#allocation22_spill]] }
 0x2cd   : > { %p1322_p1 = scmp.ge.s32.totalorder %s1678_s11, 2 }
 0x2d2   : > { %s1115_s21 = sand.u32 1, %s2302_s22   ;;  %p2304_p0 = scmp.ne.s32.totalorder %s2303_s30, 0 }
 0x2d3   : > { %s1116_s13 = scalar_lea.sflag [#allocation5], %s1115_s21 }
 0x2d4   : > { %p1314_p3 = pnand %p1322_p1, %p2304_p0 }
 0x2d6   : > { %1633 = dma.done.wait (!%p1314_p3), %s1116_s13, 128  }
 0x2d7   : > { %1635 = vsyncadd (!%p1314_p3), %s1116_s13, 4294967168  ;;  %s28_s11 = sadd.s32 1, %s1678_s11   ;;  %s2305_s18 = smov %s1864_s24 }
 0x2d8   : > { %p25_p9 = scmp.ge.s32.totalorder %s28_s11, 10   ;;  %s2306_s30 = sld [smem:[#allocation20_spill]] }
 0x2d9   : > { %s2307_s9 = sld [smem:[#allocation23_spill]]  ;;  %s2308_s20 = sld [smem:[#allocation24_spill]] }
 0x2da   : > { %s2309_s24 = smov %s1642_s25  ;;  %s2310_s25 = smov %s1646_s26 }
 0x2db   : > { %s2311_s26 = smov %s2305_s18  ;;  %s2312_s27 = smov %s1654_s28 }
 0x2dc   : > { %s2313_s28 = smov %s1658_s29  ;;  %s2314_s29 = smov %s1867_s7 }
 0x2dd   : > { %s2315_s8 = smov %s1674_s10  ;;  %27 = sbr.rel (!%p25_p9) target bundleno = 20 (0x14), region = 122 }
 0x2df   : > { %s2316_s10 = smov %s2308_s20 }
 0x2e4   :  { %1121 = vsyncpa [#allocation4], 1 }
 0x2e5   :  { %1123 = vsyncpa [#allocation4 + $0x1], 1 }
 0x2e6   :  { %1124 = vsyncpa [#allocation11], 1 }
 0x2e7   :  { %1126 = vsyncpa [#allocation11 + $0x1], 1 }
 0x2e8   :  { %1127 = vsyncpa [#allocation5], 1 }
 0x2e9   :  { %1129 = vsyncpa [#allocation5 + $0x1], 1 }
 0x2ea   :  { %1130 = vsyncpa [#allocation6], 1 }
 0x2eb   :  { %1132 = vsyncpa [#allocation6 + $0x1], 1 }
 0x2ec   :  { %1133 = vsyncpa [#allocation8], 1 }

</bundles_post_ra>
